<compile_context>
chip_gen: v6e
topology: v6e:2x2x1
jax: 0.10.0
libtpu: 0.0.40
codegen_flags: <defaults>
</compile_context>

<pallas_src>
import functools

import jax
import jax.numpy as jnp
from jax.experimental import pallas as pl
from jax.experimental.pallas import tpu as pltpu
import numpy as np


def a2l_kernel(x_ref, w1_ref, b1_ref, w2_ref, b2_ref, out_ref):
    # fc1 + ReLU  (MXU matmul, VPU add/max)
    h = jnp.dot(x_ref[...], w1_ref[...], preferred_element_type=jnp.float32)
    h = jnp.maximum(h + b1_ref[...], 0.0)            # (TB, extend_dim)
    # fc2 with the C-fold repeat folded into the weights, then sigmoid.
    z = jnp.dot(h, w2_ref[...], preferred_element_type=jnp.float32)
    z = z + b2_ref[...]                               # (TB, out_dim*C)
    out_ref[...] = jax.nn.sigmoid(z).astype(out_ref.dtype)


def _round_up(x, m):
    return ((x + m - 1) // m) * m


@functools.partial(jax.jit, static_argnames=("C", "block_b"))
def a2l_feat_atter(x, w1_t, b1, w2_t, b2, *, C, block_b=8192):
    """x:(B, in_dim) f32. w1_t:(in_dim, extend_dim), w2_t:(extend_dim, out_dim)."""
    B, in_dim = x.shape
    extend_dim = w1_t.shape[1]
    out_dim = w2_t.shape[1]
    N = out_dim * C

    # Fold the C-fold repeat into fc2's parameters (fused into the jit trace).
    w2_rep = jnp.repeat(w2_t, C, axis=1)              # (extend_dim, N)
    b2_rep = jnp.repeat(b2, C).reshape(1, N)          # (1, N)
    b1_2d = b1.reshape(1, extend_dim)                 # (1, extend_dim)

    # Batch tiling: always a multiple of 8; cap at cdiv(B,2) (rounded up to 8)
    # so that >=2 grid blocks exist whenever B > 8 (dual-TC sharding on v7x).
    tb = min(block_b, max(8, _round_up(pl.cdiv(B, 2), 8)))
    n_blocks = pl.cdiv(B, tb)                         # ragged edge handled by Pallas

    grid_spec = pl.GridSpec(
        grid=(n_blocks,),
        in_specs=[
            pl.BlockSpec((tb, in_dim), lambda i: (i, 0)),          # x: tiled over B
            pl.BlockSpec((in_dim, extend_dim), lambda i: (0, 0)),  # w1: resident
            pl.BlockSpec((1, extend_dim), lambda i: (0, 0)),       # b1: resident
            pl.BlockSpec((extend_dim, N), lambda i: (0, 0)),       # w2_rep: resident
            pl.BlockSpec((1, N), lambda i: (0, 0)),                # b2_rep: resident
        ],
        out_specs=pl.BlockSpec((tb, N), lambda i: (i, 0)),
    )

    itemsize = 4  # fp32
    cost = pl.CostEstimate(
        flops=2 * B * (in_dim * extend_dim + extend_dim * N),
        transcendentals=B * N,  # one exp per sigmoid output
        bytes_accessed=itemsize * (B * in_dim
                                   + in_dim * extend_dim + extend_dim
                                   + extend_dim * N + N
                                   + B * N),
    )

    return pl.pallas_call(
        a2l_kernel,
        out_shape=jax.ShapeDtypeStruct((B, N), jnp.float32),
        grid_spec=grid_spec,
        compiler_params=pltpu.CompilerParams(
            dimension_semantics=("parallel",),   # batch blocks are independent
            vmem_limit_bytes=64 << 20,           # v5e default scoped VMEM is 16 MiB
        ),
        cost_estimate=cost,
    )(x, w1_t, b1_2d, w2_rep, b2_rep)


def reference(x, w1_t, b1, w2_t, b2, C):
    h = jnp.maximum(x @ w1_t + b1, 0.0)
    pred = jax.nn.sigmoid(h @ w2_t + b2)              # (B, out_dim)
    rep = jnp.repeat(pred[:, :, None], C, axis=-1)    # (B, out_dim, C)
    return rep.reshape(rep.shape[0], -1)


if __name__ == "__main__":
    # module config: C=16, in_dim = 6*C = 96, extend_dim = 32, out_dim = 6
    C = 16
    in_dim = 6 * C
    extend_dim = 32
    out_dim = 6
    B = 4

    key = jax.random.PRNGKey(0)
    k_x, k_w1, k_b1, k_w2, k_b2 = jax.random.split(key, 5)

    # deterministic PyTorch-Linear-style init: U(-1/sqrt(fan_in), 1/sqrt(fan_in))
    lim1 = 1.0 / np.sqrt(in_dim)
    lim2 = 1.0 / np.sqrt(extend_dim)
    w1_t = jax.random.uniform(k_w1, (in_dim, extend_dim), jnp.float32, -lim1, lim1)
    b1 = jax.random.uniform(k_b1, (extend_dim,), jnp.float32, -lim1, lim1)
    w2_t = jax.random.uniform(k_w2, (extend_dim, out_dim), jnp.float32, -lim2, lim2)
    b2 = jax.random.uniform(k_b2, (out_dim,), jnp.float32, -lim2, lim2)

    x = jax.random.normal(k_x, (B, in_dim), jnp.float32)

    out = a2l_feat_atter(x, w1_t, b1, w2_t, b2, C=C)
    out = jax.block_until_ready(out)

    ref = reference(x, w1_t, b1, w2_t, b2, C)
    np.testing.assert_allclose(np.asarray(out), np.asarray(ref),
                               rtol=1e-5, atol=1e-5)
    assert out.shape == (B, out_dim * C)
    print("KERNEL_OK")
</pallas_src>

<mosaic_0001>
module attributes {stable_mosaic.version = 11 : i64} {
  func.func @a2l_kernel(%arg0: i32, %arg1: memref<8x96xf32, #tpu.memory_space<vmem>>, %arg2: memref<96x32xf32, #tpu.memory_space<vmem>>, %arg3: memref<1x32xf32, #tpu.memory_space<vmem>>, %arg4: memref<32x96xf32, #tpu.memory_space<vmem>>, %arg5: memref<1x96xf32, #tpu.memory_space<vmem>>, %arg6: memref<8x96xf32, #tpu.memory_space<vmem>>) attributes {dimension_semantics = [#tpu.dimension_semantics<parallel>], iteration_bounds = array<i64: 1>, scalar_prefetch = 0 : i64, scratch_operands = 0 : i64, tpu.core_type = #tpu.core_type<tc>, window_params = [{transform_indices = @transform_0, window_bounds = array<i64: 8, 96>}, {pipeline_mode = #tpu.pipeline_mode<synchronous>, transform_indices = @transform_1, window_bounds = array<i64: 96, 32>}, {pipeline_mode = #tpu.pipeline_mode<synchronous>, transform_indices = @transform_2, window_bounds = array<i64: 1, 32>}, {pipeline_mode = #tpu.pipeline_mode<synchronous>, transform_indices = @transform_3, window_bounds = array<i64: 32, 96>}, {pipeline_mode = #tpu.pipeline_mode<synchronous>, transform_indices = @transform_4, window_bounds = array<i64: 1, 96>}, {transform_indices = @transform_5, window_bounds = array<i64: 8, 96>}]} {
    %c0 = arith.constant 0 : index
    %c0_0 = arith.constant 0 : index
    %0 = vector.load %arg1[%c0, %c0_0] : memref<8x96xf32, #tpu.memory_space<vmem>>, vector<8x96xf32>
    %c0_1 = arith.constant 0 : index
    %c0_2 = arith.constant 0 : index
    %1 = vector.load %arg2[%c0_1, %c0_2] : memref<96x32xf32, #tpu.memory_space<vmem>>, vector<96x32xf32>
    %cst = arith.constant dense<0.000000e+00> : vector<8x32xf32>
    %2 = tpu.matmul %0, %1, %cst {dimension_numbers = #tpu.dot_dimension_numbers<[1], [0], [0], [1], [0, 0, 1, 1], [], []>} : vector<8x96xf32>, vector<96x32xf32>, vector<8x32xf32> -> vector<8x32xf32>
    %c0_3 = arith.constant 0 : index
    %c0_4 = arith.constant 0 : index
    %3 = vector.load %arg3[%c0_3, %c0_4] : memref<1x32xf32, #tpu.memory_space<vmem>>, vector<1x32xf32>
    %4 = vector.broadcast %3 : vector<1x32xf32> to vector<8x32xf32>
    %5 = arith.addf %2, %4 : vector<8x32xf32>
    %cst_5 = arith.constant 0.000000e+00 : f32
    %6 = vector.broadcast %cst_5 : f32 to vector<8x32xf32>
    %7 = arith.maximumf %5, %6 : vector<8x32xf32>
    %c0_6 = arith.constant 0 : index
    %c0_7 = arith.constant 0 : index
    %8 = vector.load %arg4[%c0_6, %c0_7] : memref<32x96xf32, #tpu.memory_space<vmem>>, vector<32x96xf32>
    %cst_8 = arith.constant dense<0.000000e+00> : vector<8x96xf32>
    %9 = tpu.matmul %7, %8, %cst_8 {dimension_numbers = #tpu.dot_dimension_numbers<[1], [0], [0], [1], [0, 0, 1, 1], [], []>} : vector<8x32xf32>, vector<32x96xf32>, vector<8x96xf32> -> vector<8x96xf32>
    %c0_9 = arith.constant 0 : index
    %c0_10 = arith.constant 0 : index
    %10 = vector.load %arg5[%c0_9, %c0_10] : memref<1x96xf32, #tpu.memory_space<vmem>>, vector<1x96xf32>
    %11 = vector.broadcast %10 : vector<1x96xf32> to vector<8x96xf32>
    %12 = arith.addf %9, %11 : vector<8x96xf32>
    %13 = arith.negf %12 : vector<8x96xf32>
    %14 = math.exp %13 : vector<8x96xf32>
    %cst_11 = arith.constant 1.000000e+00 : f32
    %15 = vector.broadcast %cst_11 : f32 to vector<8x96xf32>
    %16 = arith.addf %15, %14 : vector<8x96xf32>
    %17 = arith.divf %15, %16 : vector<8x96xf32>
    %c0_12 = arith.constant 0 : index
    %c0_13 = arith.constant 0 : index
    %18 = vector.load %arg6[%c0_12, %c0_13] : memref<8x96xf32, #tpu.memory_space<vmem>>, vector<8x96xf32>
    tpu.vector_store %arg6[%c0_12, %c0_13], %17 {strides = array<i32>} : memref<8x96xf32, #tpu.memory_space<vmem>>, vector<8x96xf32>,
    return
  }
  func.func @transform_0(%arg0: i32) -> (i32, i32) {
    %c0_i32 = arith.constant 0 : i32
    %c0_i32_0 = arith.constant 0 : i32
    return %arg0, %c0_i32 : i32, i32
  }
  func.func @transform_1(%arg0: i32) -> (i32, i32) {
    %c0_i32 = arith.constant 0 : i32
    %c0_i32_0 = arith.constant 0 : i32
    %c0_i32_1 = arith.constant 0 : i32
    return %c0_i32, %c0_i32_0 : i32, i32
  }
  func.func @transform_2(%arg0: i32) -> (i32, i32) {
    %c0_i32 = arith.constant 0 : i32
    %c0_i32_0 = arith.constant 0 : i32
    %c0_i32_1 = arith.constant 0 : i32
    return %c0_i32, %c0_i32_0 : i32, i32
  }
  func.func @transform_3(%arg0: i32) -> (i32, i32) {
    %c0_i32 = arith.constant 0 : i32
    %c0_i32_0 = arith.constant 0 : i32
    %c0_i32_1 = arith.constant 0 : i32
    return %c0_i32, %c0_i32_0 : i32, i32
  }
  func.func @transform_4(%arg0: i32) -> (i32, i32) {
    %c0_i32 = arith.constant 0 : i32
    %c0_i32_0 = arith.constant 0 : i32
    %c0_i32_1 = arith.constant 0 : i32
    return %c0_i32, %c0_i32_0 : i32, i32
  }
  func.func @transform_5(%arg0: i32) -> (i32, i32) {
    %c0_i32 = arith.constant 0 : i32
    %c0_i32_0 = arith.constant 0 : i32
    return %arg0, %c0_i32 : i32, i32
  }
}

</mosaic_0001>

<bundles_post_ra>
// kernel: a2l_feat_atter.1
= control target key start
LH: loop header
LB: loop body
LE: loop exit
PB: predicated region body
PF: predicated region fallthrough
CT: control target
= control target key end

     0   :  { %10 = vsyncpa [#allocation3], 0  ;;  %v316_v1 = vmov 0.0   ;;  %vm317_vm0 = vmmov 0   ;;  %vm41_vm1 = vcmask 785408   ;;  %vm127_vm2 = vcmask 261120   ;;  %s413_s0 = inlined_call_operand.vmem [shape: f32[4,96], index: 0, kind: input, shape index: {}]   ;;  %s414_s1 = inlined_call_operand.vmem [shape: f32[96,32], index: 1, kind: input, shape index: {}]   ;;  %s415_s2 = inlined_call_operand.vmem [shape: f32[1,32], index: 2, kind: input, shape index: {}]   ;;  %s416_s3 = inlined_call_operand.vmem [shape: f32[32,96], index: 3, kind: input, shape index: {}]   ;;  %s417_s4 = inlined_call_operand.vmem [shape: f32[1,96], index: 4, kind: input, shape index: {}]   ;;  %s418_s5 = inlined_call_operand.hbm [shape: f32[4,96], index: 5, kind: output, shape index: {}]  }
   0x1   :  { %v33_v0 = vld [vmem:[%s414_s1 + $0x58] sm:$0xff]  ;;  %247 = vmatprep.subr.mxu0 %v316_v1  ;;  %v32_v2 = vld [vmem:[%s414_s1 + $0x50] sm:$0xff]  ;;  %271 = vmatprep.mubr.msk.f32.mxu0 %vm317_vm0, %v316_v1  ;;  %v31_v3 = vld [vmem:[%s414_s1 + $0x48] sm:$0xff] }
   0x2   :  { %248 = vmatpush3.msra.mxu0 %v33_v0  ;;  %274 = vmatprep.subr.mxu1 %v316_v1  ;;  %v119_v4 = vld [vmem:[%s416_s3 + $0x18] sm:$0xff]  ;;  %v30_v5 = vld [vmem:[%s414_s1 + $0x40] sm:$0xff]  ;;  %v28_v7 = vld [vmem:[%s414_s1 + $0x30] sm:$0xff] }
   0x3   :  { %249 = vmatprep.subr.mxu0 %v316_v1  ;;  %282 = vmatprep.mubr.msk.f32.mxu1 %vm317_vm0, %v316_v1  ;;  %v29_v6 = vld [vmem:[%s414_s1 + $0x38] sm:$0xff]  ;;  %v27_v8 = vld [vmem:[%s414_s1 + $0x28] sm:$0xff]  ;;  %v26_v9 = vld [vmem:[%s414_s1 + $0x20] sm:$0xff] }
   0x4   :  { %250 = vmatpush3.msra.mxu0 %v32_v2  ;;  %275 = vmatpush3.msra.mxu1 %v119_v4  ;;  %v25_v10 = vld [vmem:[%s414_s1 + $0x18] sm:$0xff]  ;;  %v24_v11 = vld [vmem:[%s414_s1 + $0x10] sm:$0xff]  ;;  %v23_v12 = vld [vmem:[%s414_s1 + $0x8] sm:$0xff] }
   0x5   :  { %251 = vmatprep.subr.mxu0 %v316_v1  ;;  %276 = vmatprep.subr.mxu1 %v316_v1  ;;  %v22_v13 = vld [vmem:[%s414_s1] sm:$0xff]  ;;  %v118_v15 = vld [vmem:[%s416_s3 + $0x10] sm:$0xff]  ;;  %v117_v16 = vld [vmem:[%s416_s3 + $0x8] sm:$0xff] }
   0x6   :  { %252 = vmatpush3.msra.mxu0 %v31_v3  ;;  %v21_v14 = vld [vmem:[%s413_s0] sm:$0xff]  ;;  %277 = vmatpush3.msra.mxu1 %v118_v15 }
   0x7   :  { %253 = vmatprep.subr.mxu0 %v316_v1  ;;  %278 = vmatprep.subr.mxu1 %v316_v1  ;;  %v116_v17 = vld [vmem:[%s416_s3] sm:$0xff] }
   0x8   :  { %254 = vmatpush3.msra.mxu0 %v30_v5  ;;  %279 = vmatpush3.msra.mxu1 %v117_v16  ;;  %v224_v18 = vld [vmem:[%s415_s2] ss:$0 sm:$0xff] }
   0x9   :  { %255 = vmatprep.subr.mxu0 %v316_v1  ;;  %280 = vmatprep.subr.mxu1 %v316_v1  ;;  %v226_v23 = vld [vmem:[%s417_s4] ss:$0 sm:$0xff] }
   0xa   :  { %256 = vmatpush3.msra.mxu0 %v29_v6  ;;  %281 = vmatpush3.msra.mxu1 %v116_v17 }
   0xb   :  { %257 = vmatprep.subr.mxu0 %v316_v1 }
   0xc   :  { %258 = vmatpush3.msra.mxu0 %v28_v7 }
   0xd   :  { %259 = vmatprep.subr.mxu0 %v316_v1 }
   0xe   :  { %260 = vmatpush3.msra.mxu0 %v27_v8 }
   0xf   :  { %261 = vmatprep.subr.mxu0 %v316_v1 }
  0x10   :  { %262 = vmatpush3.msra.mxu0 %v26_v9 }
  0x11   :  { %263 = vmatprep.subr.mxu0 %v316_v1 }
  0x12   :  { %264 = vmatpush3.msra.mxu0 %v25_v10 }
  0x13   :  { %265 = vmatprep.subr.mxu0 %v316_v1 }
  0x14   :  { %266 = vmatpush3.msra.mxu0 %v24_v11 }
  0x15   :  { %267 = vmatprep.subr.mxu0 %v316_v1 }
  0x16   :  { %268 = vmatpush3.msra.mxu0 %v23_v12 }
  0x17   :  { %269 = vmatprep.subr.mxu0 %v316_v1 }
  0x18   :  { %270 = vmatpush3.msra.mxu0 %v22_v13 }
  0x19   :  { %272 = vmatmul.mubr.msk.f32.vlgmr.msra.gmra.mxu0 %vm41_vm1, %v21_v14 }
  0xd9   :  { %v111_v19 = vpop.f32.mrf.mxu0 }
  0xda   :  { %v112_v20 = vadd.f32 %v224_v18, %v111_v19 }
  0xdb   :  { %v273_v21 = vpop.f32.mrf.mxu0 }
  0xdc   :  { %v115_v22 = vmax.f32 %v112_v20, 0.0 }
  0xde   :  { %283 = vmatmul.mubr.msk.f32.vlgmr.msra.gmra.mxu1 %vm127_vm2, %v115_v22 }
 0x19e   :  { %v197_v24 = vpop.f32.mrf.mxu1 }
 0x19f   :  { %v198_v25 = vadd.f32 %v226_v23, %v197_v24 }
 0x1a0   :  { %v284_v26 = vpop.f32.mrf.mxu1 }
 0x1a1   :  { %v228_v27 = vmul.f32 -1.442695, %v198_v25 }
 0x1a3   :  { %290 = vpow2.f32 %v228_v27 }
 0x1b0   :  { %v291_v28 = vpop.eup %290 }
 0x1b1   :  { %v204_v29 = vadd.f32 1.0, %v291_v28 }
 0x1b3   :  { %292 = vrcp.f32 %v204_v29 }
 0x1c0   :  { %v293_v30 = vpop.eup %292 }
 0x1c1   :  { %207 = vst.msk [vmem:[#allocation2] sm:$0xff] %vm41_vm1, %v293_v30 }
 0x1c2   :  { %212 = vsyncadd [#allocation3], 64  ;;  %s318_s2 = smov [#allocation2]  }
 0x1c3   :  { %s213_s3 = sshll.u32 %s318_s2, 4  ;;  %s214_s3 = int_to_ptr.vmem [resolvable:$true] %s213_s3 }
 0x1c4   :  { %s294_s29 = scalar_lea.vmem %s214_s3, 64  ;;  %s298_s30 = scalar_lea.vmem %s214_s3, 128 }
 0x1c5   :  { %p295_p0 = scmp.ne.s32.totalorder %s214_s3, %s294_s29  ;;  %p299_p1 = scmp.lt.s32.totalorder %s214_s3, %s214_s3 }
 0x1c6   :  { %p300_p2 = scmp.lt.s32.totalorder %s298_s30, %s294_s29 }
 0x1c8   :  { %p301_p3 = por %p300_p2, %p299_p1 }
 0x1ca   :  { %p302_p4 = pnand %p301_p3, %p295_p0 }
 0x1cc   :  { %305 = shalt.err (!%p302_p4)
}
 0x1cd   :  { %s319_s4 = smov 64   ;;  %s320_s6 = smov 4  }
 0x1ce   :  { %219 = dma.vmem_to_hbm [thread:$0]  %s214_s3, 64, %s418_s5, [#allocation3], %s319_s4, %s319_s4, %s320_s6  }
 0x1cf   :  { %314 = dma.done.wait [#allocation3], 128  }
 0x1d0   :  { %315 = vsyncadd [#allocation3], 4294967168 }
 0x1d1   :  { %223 = vsyncpa [#allocation3], 1 }

</bundles_post_ra>
